<compile_context>
chip_gen: v6e
topology: v6e:2x2x1
jax: 0.10.0
libtpu: 0.0.40
codegen_flags: <defaults>
</compile_context>

<pallas_src>
import functools

import jax
import jax.numpy as jnp
from jax.experimental import pallas as pl
from jax.experimental.pallas import tpu as pltpu


# conv hyper-parameters of the assumed CNN stack
KH, KW, STRIDE, PAD = 3, 3, 2, 1
CLASS_PAD = 128                     # padded class-lane width per latent group
VMEM_LIMIT = 48 * 1024 * 1024       # fits v7x (64 MiB physical), > 32 MiB default


def _round_up(x, m):
    return ((x + m - 1) // m) * m


# ----------------------------- Pallas kernels ------------------------------ #

def _linear_kernel(x_ref, w_ref, b_ref, o_ref, acc_ref, *, apply_relu):
    """Tiled matmul with f32 accumulator; bias (+ReLU) fused in the epilogue."""
    k = pl.program_id(2)

    @pl.when(k == 0)
    def _():
        acc_ref[...] = jnp.zeros_like(acc_ref)

    acc_ref[...] += jnp.dot(x_ref[...], w_ref[...],
                            preferred_element_type=jnp.float32)

    @pl.when(k == pl.num_programs(2) - 1)
    def _():
        out = acc_ref[...] + b_ref[...]
        if apply_relu:
            out = jnp.maximum(out, 0.0)
        o_ref[...] = out.astype(o_ref.dtype)


def _output_softmax_kernel(x_ref, w_ref, b_ref, logit_ref, p_ref, acc_ref):
    """Output Linear fused with the per-latent-group categorical softmax.

    Grid axis j walks the latent groups, so each (tm, 128) output tile is
    exactly one group: the softmax over axis=-1 of the tile is the group
    softmax (padded classes carry -1e30 bias -> exp == 0)."""
    k = pl.program_id(2)

    @pl.when(k == 0)
    def _():
        acc_ref[...] = jnp.zeros_like(acc_ref)

    acc_ref[...] += jnp.dot(x_ref[...], w_ref[...],
                            preferred_element_type=jnp.float32)

    @pl.when(k == pl.num_programs(2) - 1)
    def _():
        logits = acc_ref[...] + b_ref[...]
        logit_ref[...] = logits
        m = jnp.max(logits, axis=-1, keepdims=True)
        e = jnp.exp(logits - m)
        denom = jnp.sum(e, axis=-1, keepdims=True)
        p_ref[...] = e * pl.reciprocal(denom, approx=True)


# ------------------------------ kernel wrappers ----------------------------- #

def pallas_linear(x, w, b, *, relu, tm=256, tn=256, tk=512):
    """x: (M, K), w: (K, N), b: (N,) f32 -> f32 (M, N).

    Inputs are cast to bf16 and zero-padded so the lane / reduction dims are
    multiples of 128; accumulation is f32 in a VMEM scratch."""
    M, K = x.shape
    Kw, N = w.shape
    assert K == Kw, (x.shape, w.shape)

    tm = min(tm, _round_up(M, 16))
    tn = min(tn, _round_up(N, 128))
    tk = min(tk, _round_up(K, 128))
    Mp, Kp, Np = _round_up(M, tm), _round_up(K, tk), _round_up(N, tn)

    xp = jnp.pad(x.astype(jnp.bfloat16), ((0, Mp - M), (0, Kp - K)))
    wp = jnp.pad(w.astype(jnp.bfloat16), ((0, Kp - K), (0, Np - N)))
    bp = jnp.pad(b.astype(jnp.float32), (0, Np - N)).reshape(1, Np)

    grid = (Mp // tm, Np // tn, Kp // tk)
    out = pl.pallas_call(
        functools.partial(_linear_kernel, apply_relu=relu),
        out_shape=jax.ShapeDtypeStruct((Mp, Np), jnp.float32),
        grid_spec=pltpu.PrefetchScalarGridSpec(
            num_scalar_prefetch=0,
            grid=grid,
            in_specs=[
                pl.BlockSpec((tm, tk), lambda i, j, k: (i, k)),
                pl.BlockSpec((tk, tn), lambda i, j, k: (k, j)),
                pl.BlockSpec((1, tn), lambda i, j, k: (0, j)),
            ],
            out_specs=pl.BlockSpec((tm, tn), lambda i, j, k: (i, j)),
            scratch_shapes=[pltpu.VMEM((tm, tn), jnp.float32)],
        ),
        compiler_params=pltpu.CompilerParams(
            dimension_semantics=("parallel", "parallel", "arbitrary"),
            vmem_limit_bytes=VMEM_LIMIT,
        ),
    )(xp, wp, bp)
    return out[:M, :N]


def pallas_output_softmax(x, w, b, *, latent_dim, num_classes, tm=256, tk=512):
    """Fused output Linear + categorical softmax.

    x: (M, K), w: (K, latent_dim*num_classes), b: (latent_dim*num_classes,)
    Returns (logits, p_z), each (M, latent_dim, num_classes), f32."""
    M, K = x.shape
    Cp = CLASS_PAD
    tm = min(tm, _round_up(M, 16))
    tk = min(tk, _round_up(K, 128))
    Mp, Kp = _round_up(M, tm), _round_up(K, tk)

    xp = jnp.pad(x.astype(jnp.bfloat16), ((0, Mp - M), (0, Kp - K)))

    # Re-arrange weight/bias so each latent group owns a lane-dense 128-wide
    # slab; padded class columns get zero weight and -1e30 bias so the fused
    # softmax ignores them.
    w3 = w.reshape(K, latent_dim, num_classes).astype(jnp.bfloat16)
    wp = jnp.zeros((Kp, latent_dim, Cp), jnp.bfloat16)
    wp = wp.at[:K, :, :num_classes].set(w3).reshape(Kp, latent_dim * Cp)
    b3 = b.reshape(latent_dim, num_classes).astype(jnp.float32)
    bp = jnp.full((1, latent_dim, Cp), -1e30, jnp.float32)
    bp = bp.at[0, :, :num_classes].set(b3).reshape(1, latent_dim * Cp)

    grid = (Mp // tm, latent_dim, Kp // tk)
    logits_p, p_p = pl.pallas_call(
        _output_softmax_kernel,
        out_shape=(jax.ShapeDtypeStruct((Mp, latent_dim * Cp), jnp.float32),
                   jax.ShapeDtypeStruct((Mp, latent_dim * Cp), jnp.float32)),
        grid_spec=pltpu.PrefetchScalarGridSpec(
            num_scalar_prefetch=0,
            grid=grid,
            in_specs=[
                pl.BlockSpec((tm, tk), lambda i, j, k: (i, k)),
                pl.BlockSpec((tk, Cp), lambda i, j, k: (k, j)),
                pl.BlockSpec((1, Cp), lambda i, j, k: (0, j)),
            ],
            out_specs=(
                pl.BlockSpec((tm, Cp), lambda i, j, k: (i, j)),
                pl.BlockSpec((tm, Cp), lambda i, j, k: (i, j)),
            ),
            scratch_shapes=[pltpu.VMEM((tm, Cp), jnp.float32)],
        ),
        compiler_params=pltpu.CompilerParams(
            dimension_semantics=("parallel", "parallel", "arbitrary"),
            vmem_limit_bytes=VMEM_LIMIT,
        ),
    )(xp, wp, bp)

    logits = logits_p.reshape(Mp, latent_dim, Cp)[:M, :, :num_classes]
    p_z = p_p.reshape(Mp, latent_dim, Cp)[:M, :, :num_classes]
    return logits, p_z


# ------------------------------ glue (plain JAX) --------------------------- #

def im2col_nhwc(x, kh, kw, stride, pad):
    """x: (B, H, W, C) -> (B*Ho*Wo, kh*kw*C); feature order (i, j, c)."""
    B, H, W, C = x.shape
    xp = jnp.pad(x, ((0, 0), (pad, pad), (pad, pad), (0, 0)))
    Ho = (H + 2 * pad - kh) // stride + 1
    Wo = (W + 2 * pad - kw) // stride + 1
    cols = []
    for i in range(kh):
        for j in range(kw):
            cols.append(
                xp[:, i:i + stride * Ho:stride, j:j + stride * Wo:stride, :])
    cols = jnp.concatenate(cols, axis=-1)          # (B, Ho, Wo, kh*kw*C)
    return cols.reshape(B * Ho * Wo, kh * kw * C), Ho, Wo


def conv2d_relu_nhwc(x, w2d, b):
    """x: (B, H, W, Cin), w2d: (kh*kw*Cin, Cout), b: (Cout,) -> (B, Ho, Wo, Cout)."""
    B = x.shape[0]
    cols, Ho, Wo = im2col_nhwc(x, KH, KW, STRIDE, PAD)
    y = pallas_linear(cols, w2d, b, relu=True)     # MXU hot path
    return y.reshape(B, Ho, Wo, -1)


# ------------------------------ parameter setup ---------------------------- #

def init_params(key, in_channels, img_size, conv_layers, fc_layers,
                latent_dim, num_classes, aux_size=0):
    """Parameters in PyTorch layouts (Conv2d OIHW, Linear as (in, out))."""
    params = {"conv": [], "fc": []}
    c, s = in_channels, img_size
    for out_c in conv_layers:
        key, k1, k2 = jax.random.split(key, 3)
        fan_in = c * KH * KW
        w = jax.random.normal(k1, (out_c, c, KH, KW), jnp.float32) / jnp.sqrt(fan_in)
        b = 0.01 * jax.random.normal(k2, (out_c,), jnp.float32)
        params["conv"].append((w, b))
        c = out_c
        s = (s + 2 * PAD - KH) // STRIDE + 1
    d = c * s * s + aux_size
    for h in fc_layers:
        key, k1, k2 = jax.random.split(key, 3)
        w = jax.random.normal(k1, (d, h), jnp.float32) / jnp.sqrt(d)
        b = 0.01 * jax.random.normal(k2, (h,), jnp.float32)
        params["fc"].append((w, b))
        d = h
    key, k1, k2 = jax.random.split(key, 3)
    params["out_w"] = jax.random.normal(
        k1, (d, latent_dim * num_classes), jnp.float32) / jnp.sqrt(d)
    params["out_b"] = 0.01 * jax.random.normal(
        k2, (latent_dim * num_classes,), jnp.float32)
    return params


def prepare_params(params):
    """One-time conversion to matmul-ready layouts (no per-forward transposes)."""
    prepared = {"conv": [], "fc": [(w, b) for (w, b) in params["fc"]],
                "out_w": params["out_w"], "out_b": params["out_b"]}
    for (w, b) in params["conv"]:
        cout, cin, kh, kw = w.shape
        # OIHW -> (kh, kw, Cin, Cout) -> (kh*kw*Cin, Cout); matches im2col (i,j,c).
        w2d = jnp.transpose(w, (2, 3, 1, 0)).reshape(kh * kw * cin, cout)
        prepared["conv"].append((w2d, b))
    return prepared


# ------------------------------ forward pass ------------------------------- #

def conv_encoder_categorical_forward(prepared, x, *, latent_dim, num_classes,
                                     aux=None, aux_size=0):
    if aux_size == 0:
        aux = None
    # NCHW input (PyTorch convention) -> NHWC once at the boundary; stays NHWC
    # between conv layers (no per-layer transposes).
    h = jnp.transpose(x, (0, 2, 3, 1))
    for (w2d, b) in prepared["conv"]:
        h = conv2d_relu_nhwc(h, w2d, b)
    B = h.shape[0]
    # Single tiny transpose at the flatten boundary to match
    # torch.flatten(NCHW feature map, start_dim=1) ordering exactly.
    emb = jnp.transpose(h, (0, 3, 1, 2)).reshape(B, -1)
    if aux is not None:
        emb = jnp.concatenate([emb, aux], axis=-1)
    for (w, b) in prepared["fc"]:
        emb = pallas_linear(emb, w, b, relu=True)
    logits, p_z = pallas_output_softmax(
        emb, prepared["out_w"], prepared["out_b"],
        latent_dim=latent_dim, num_classes=num_classes)
    return logits, p_z


# ------------------------------ f32 reference ------------------------------ #

def reference_forward(params, x, *, latent_dim, num_classes):
    h = x
    for (w, b) in params["conv"]:
        h = jax.lax.conv_general_dilated(
            h, w, window_strides=(STRIDE, STRIDE),
            padding=((PAD, PAD), (PAD, PAD)),
            dimension_numbers=("NCHW", "OIHW", "NCHW"))
        h = jnp.maximum(h + b.reshape(1, -1, 1, 1), 0.0)
    emb = h.reshape(h.shape[0], -1)
    for (w, b) in params["fc"]:
        emb = jnp.maximum(emb @ w + b, 0.0)
    logits = (emb @ params["out_w"] + params["out_b"]).reshape(
        -1, latent_dim, num_classes)
    return logits, jax.nn.softmax(logits, axis=-1)


# ------------------------------------ main --------------------------------- #

if __name__ == "__main__":
    batch = 2
    in_channels = 4
    img_size = 16
    conv_layers = [8, 16]     # two stride-2 convs: 16 -> 8 -> 4 spatial
    fc_layers = [32]
    latent_dim = 6
    num_classes = 5
    aux_size = 0

    key = jax.random.PRNGKey(0)
    key, kx, kp = jax.random.split(key, 3)
    x = jax.random.normal(kx, (batch, in_channels, img_size, img_size), jnp.float32)
    params = init_params(kp, in_channels, img_size, conv_layers, fc_layers,
                         latent_dim, num_classes, aux_size)
    prepared = prepare_params(params)

    fwd = jax.jit(functools.partial(
        conv_encoder_categorical_forward,
        latent_dim=latent_dim, num_classes=num_classes, aux_size=aux_size))

    logits, p_z = fwd(prepared, x)
    logits = jax.block_until_ready(logits)
    p_z = jax.block_until_ready(p_z)

    ref_logits, ref_p = reference_forward(
        params, x, latent_dim=latent_dim, num_classes=num_classes)

    assert logits.shape == (batch, latent_dim, num_classes), logits.shape
    assert p_z.shape == (batch, latent_dim, num_classes), p_z.shape
    assert jnp.all(jnp.isfinite(logits)) and jnp.all(jnp.isfinite(p_z))
    assert jnp.allclose(jnp.sum(p_z, axis=-1), 1.0, atol=5e-3)
    # bf16 matmul inputs + f32 accumulation -> loose but meaningful tolerances.
    assert jnp.allclose(logits, ref_logits, atol=5e-2, rtol=5e-2), \
        float(jnp.max(jnp.abs(logits - ref_logits)))
    assert jnp.allclose(p_z, ref_p, atol=2e-2), \
        float(jnp.max(jnp.abs(p_z - ref_p)))

    print("KERNEL_OK")
</pallas_src>

<mosaic_0001>
module attributes {stable_mosaic.version = 11 : i64} {
  func.func @_linear_kernel(%arg0: i32, %arg1: i32, %arg2: i32, %arg3: memref<128x128xbf16, #tpu.memory_space<vmem>>, %arg4: memref<128x128xbf16, #tpu.memory_space<vmem>>, %arg5: memref<1x128xf32, #tpu.memory_space<vmem>>, %arg6: memref<128x128xf32, #tpu.memory_space<vmem>>, %arg7: memref<128x128xf32, #tpu.memory_space<vmem>>) attributes {dimension_semantics = [#tpu.dimension_semantics<parallel>, #tpu.dimension_semantics<parallel>, #tpu.dimension_semantics<arbitrary>], iteration_bounds = array<i64: 1, 1, 1>, scalar_prefetch = 0 : i64, scratch_operands = 1 : i64, tpu.core_type = #tpu.core_type<tc>, window_params = [{transform_indices = @transform_0, window_bounds = array<i64: 128, 128>}, {transform_indices = @transform_1, window_bounds = array<i64: 128, 128>}, {transform_indices = @transform_2, window_bounds = array<i64: 1, 128>}, {transform_indices = @transform_3, window_bounds = array<i64: 128, 128>}]} {
    %c0_i32 = arith.constant 0 : i32
    %0 = arith.cmpi eq, %arg2, %c0_i32 : i32
    %1 = arith.extui %0 : i1 to i32
    %c0_i32_0 = arith.constant 0 : i32
    %2 = arith.cmpi ne, %1, %c0_i32_0 : i32
    scf.if %2 {
      %cst_10 = arith.constant 0.000000e+00 : f32
      %12 = vector.broadcast %cst_10 : f32 to vector<128x128xf32>
      %c0_11 = arith.constant 0 : index
      %c0_12 = arith.constant 0 : index
      %13 = vector.load %arg7[%c0_11, %c0_12] : memref<128x128xf32, #tpu.memory_space<vmem>>, vector<128x128xf32>
      tpu.vector_store %arg7[%c0_11, %c0_12], %12 {strides = array<i32>} : memref<128x128xf32, #tpu.memory_space<vmem>>, vector<128x128xf32>,
    } else {
    }
    %c0 = arith.constant 0 : index
    %c0_1 = arith.constant 0 : index
    %3 = vector.load %arg7[%c0, %c0_1] : memref<128x128xf32, #tpu.memory_space<vmem>>, vector<128x128xf32>
    %c0_2 = arith.constant 0 : index
    %c0_3 = arith.constant 0 : index
    %4 = vector.load %arg3[%c0_2, %c0_3] : memref<128x128xbf16, #tpu.memory_space<vmem>>, vector<128x128xbf16>
    %c0_4 = arith.constant 0 : index
    %c0_5 = arith.constant 0 : index
    %5 = vector.load %arg4[%c0_4, %c0_5] : memref<128x128xbf16, #tpu.memory_space<vmem>>, vector<128x128xbf16>
    %cst = arith.constant dense<0.000000e+00> : vector<128x128xf32>
    %6 = tpu.matmul %4, %5, %cst {dimension_numbers = #tpu.dot_dimension_numbers<[1], [0], [0], [1], [0, 0, 1, 1], [], []>} : vector<128x128xbf16>, vector<128x128xbf16>, vector<128x128xf32> -> vector<128x128xf32>
    %7 = arith.addf %3, %6 : vector<128x128xf32>
    %c0_6 = arith.constant 0 : index
    %c0_7 = arith.constant 0 : index
    %8 = vector.load %arg7[%c0_6, %c0_7] : memref<128x128xf32, #tpu.memory_space<vmem>>, vector<128x128xf32>
    tpu.vector_store %arg7[%c0_6, %c0_7], %7 {strides = array<i32>} : memref<128x128xf32, #tpu.memory_space<vmem>>, vector<128x128xf32>,
    %c0_i32_8 = arith.constant 0 : i32
    %9 = arith.cmpi eq, %arg2, %c0_i32_8 : i32
    %10 = arith.extui %9 : i1 to i32
    %c0_i32_9 = arith.constant 0 : i32
    %11 = arith.cmpi ne, %10, %c0_i32_9 : i32
    scf.if %11 {
      %c0_10 = arith.constant 0 : index
      %c0_11 = arith.constant 0 : index
      %12 = vector.load %arg7[%c0_10, %c0_11] : memref<128x128xf32, #tpu.memory_space<vmem>>, vector<128x128xf32>
      %c0_12 = arith.constant 0 : index
      %c0_13 = arith.constant 0 : index
      %13 = vector.load %arg5[%c0_12, %c0_13] : memref<1x128xf32, #tpu.memory_space<vmem>>, vector<1x128xf32>
      %14 = vector.broadcast %13 : vector<1x128xf32> to vector<128x128xf32>
      %15 = arith.addf %12, %14 : vector<128x128xf32>
      %cst_14 = arith.constant 0.000000e+00 : f32
      %16 = vector.broadcast %cst_14 : f32 to vector<128x128xf32>
      %17 = arith.maximumf %15, %16 : vector<128x128xf32>
      %c0_15 = arith.constant 0 : index
      %c0_16 = arith.constant 0 : index
      %18 = vector.load %arg6[%c0_15, %c0_16] : memref<128x128xf32, #tpu.memory_space<vmem>>, vector<128x128xf32>
      tpu.vector_store %arg6[%c0_15, %c0_16], %17 {strides = array<i32>} : memref<128x128xf32, #tpu.memory_space<vmem>>, vector<128x128xf32>,
    } else {
    }
    return
  }
  func.func @transform_0(%arg0: i32, %arg1: i32, %arg2: i32) -> (i32, i32) {
    %c0_i32 = arith.constant 0 : i32
    return %arg0, %arg2 : i32, i32
  }
  func.func @transform_1(%arg0: i32, %arg1: i32, %arg2: i32) -> (i32, i32) {
    %c0_i32 = arith.constant 0 : i32
    return %arg2, %arg1 : i32, i32
  }
  func.func @transform_2(%arg0: i32, %arg1: i32, %arg2: i32) -> (i32, i32) {
    %c0_i32 = arith.constant 0 : i32
    %c0_i32_0 = arith.constant 0 : i32
    return %c0_i32, %arg1 : i32, i32
  }
  func.func @transform_3(%arg0: i32, %arg1: i32, %arg2: i32) -> (i32, i32) {
    %c0_i32 = arith.constant 0 : i32
    return %arg0, %arg1 : i32, i32
  }
}

module attributes {stable_mosaic.version = 11 : i64} {
  func.func @_linear_kernel(%arg0: i32, %arg1: i32, %arg2: i32, %arg3: memref<32x128xbf16, #tpu.memory_space<vmem>>, %arg4: memref<128x128xbf16, #tpu.memory_space<vmem>>, %arg5: memref<1x128xf32, #tpu.memory_space<vmem>>, %arg6: memref<32x128xf32, #tpu.memory_space<vmem>>, %arg7: memref<32x128xf32, #tpu.memory_space<vmem>>) attributes {dimension_semantics = [#tpu.dimension_semantics<parallel>, #tpu.dimension_semantics<parallel>, #tpu.dimension_semantics<arbitrary>], iteration_bounds = array<i64: 1, 1, 1>, scalar_prefetch = 0 : i64, scratch_operands = 1 : i64, tpu.core_type = #tpu.core_type<tc>, window_params = [{transform_indices = @transform_0, window_bounds = array<i64: 32, 128>}, {transform_indices = @transform_1, window_bounds = array<i64: 128, 128>}, {transform_indices = @transform_2, window_bounds = array<i64: 1, 128>}, {transform_indices = @transform_3, window_bounds = array<i64: 32, 128>}]} {
    %c0_i32 = arith.constant 0 : i32
    %0 = arith.cmpi eq, %arg2, %c0_i32 : i32
    %1 = arith.extui %0 : i1 to i32
    %c0_i32_0 = arith.constant 0 : i32
    %2 = arith.cmpi ne, %1, %c0_i32_0 : i32
    scf.if %2 {
      %cst_10 = arith.constant 0.000000e+00 : f32
      %12 = vector.broadcast %cst_10 : f32 to vector<32x128xf32>
      %c0_11 = arith.constant 0 : index
      %c0_12 = arith.constant 0 : index
      %13 = vector.load %arg7[%c0_11, %c0_12] : memref<32x128xf32, #tpu.memory_space<vmem>>, vector<32x128xf32>
      tpu.vector_store %arg7[%c0_11, %c0_12], %12 {strides = array<i32>} : memref<32x128xf32, #tpu.memory_space<vmem>>, vector<32x128xf32>,
    } else {
    }
    %c0 = arith.constant 0 : index
    %c0_1 = arith.constant 0 : index
    %3 = vector.load %arg7[%c0, %c0_1] : memref<32x128xf32, #tpu.memory_space<vmem>>, vector<32x128xf32>
    %c0_2 = arith.constant 0 : index
    %c0_3 = arith.constant 0 : index
    %4 = vector.load %arg3[%c0_2, %c0_3] : memref<32x128xbf16, #tpu.memory_space<vmem>>, vector<32x128xbf16>
    %c0_4 = arith.constant 0 : index
    %c0_5 = arith.constant 0 : index
    %5 = vector.load %arg4[%c0_4, %c0_5] : memref<128x128xbf16, #tpu.memory_space<vmem>>, vector<128x128xbf16>
    %cst = arith.constant dense<0.000000e+00> : vector<32x128xf32>
    %6 = tpu.matmul %4, %5, %cst {dimension_numbers = #tpu.dot_dimension_numbers<[1], [0], [0], [1], [0, 0, 1, 1], [], []>} : vector<32x128xbf16>, vector<128x128xbf16>, vector<32x128xf32> -> vector<32x128xf32>
    %7 = arith.addf %3, %6 : vector<32x128xf32>
    %c0_6 = arith.constant 0 : index
    %c0_7 = arith.constant 0 : index
    %8 = vector.load %arg7[%c0_6, %c0_7] : memref<32x128xf32, #tpu.memory_space<vmem>>, vector<32x128xf32>
    tpu.vector_store %arg7[%c0_6, %c0_7], %7 {strides = array<i32>} : memref<32x128xf32, #tpu.memory_space<vmem>>, vector<32x128xf32>,
    %c0_i32_8 = arith.constant 0 : i32
    %9 = arith.cmpi eq, %arg2, %c0_i32_8 : i32
    %10 = arith.extui %9 : i1 to i32
    %c0_i32_9 = arith.constant 0 : i32
    %11 = arith.cmpi ne, %10, %c0_i32_9 : i32
    scf.if %11 {
      %c0_10 = arith.constant 0 : index
      %c0_11 = arith.constant 0 : index
      %12 = vector.load %arg7[%c0_10, %c0_11] : memref<32x128xf32, #tpu.memory_space<vmem>>, vector<32x128xf32>
      %c0_12 = arith.constant 0 : index
      %c0_13 = arith.constant 0 : index
      %13 = vector.load %arg5[%c0_12, %c0_13] : memref<1x128xf32, #tpu.memory_space<vmem>>, vector<1x128xf32>
      %14 = vector.broadcast %13 : vector<1x128xf32> to vector<32x128xf32>
      %15 = arith.addf %12, %14 : vector<32x128xf32>
      %cst_14 = arith.constant 0.000000e+00 : f32
      %16 = vector.broadcast %cst_14 : f32 to vector<32x128xf32>
      %17 = arith.maximumf %15, %16 : vector<32x128xf32>
      %c0_15 = arith.constant 0 : index
      %c0_16 = arith.constant 0 : index
      %18 = vector.load %arg6[%c0_15, %c0_16] : memref<32x128xf32, #tpu.memory_space<vmem>>, vector<32x128xf32>
      tpu.vector_store %arg6[%c0_15, %c0_16], %17 {strides = array<i32>} : memref<32x128xf32, #tpu.memory_space<vmem>>, vector<32x128xf32>,
    } else {
    }
    return
  }
  func.func @transform_0(%arg0: i32, %arg1: i32, %arg2: i32) -> (i32, i32) {
    %c0_i32 = arith.constant 0 : i32
    return %arg0, %arg2 : i32, i32
  }
  func.func @transform_1(%arg0: i32, %arg1: i32, %arg2: i32) -> (i32, i32) {
    %c0_i32 = arith.constant 0 : i32
    return %arg2, %arg1 : i32, i32
  }
  func.func @transform_2(%arg0: i32, %arg1: i32, %arg2: i32) -> (i32, i32) {
    %c0_i32 = arith.constant 0 : i32
    %c0_i32_0 = arith.constant 0 : i32
    return %c0_i32, %arg1 : i32, i32
  }
  func.func @transform_3(%arg0: i32, %arg1: i32, %arg2: i32) -> (i32, i32) {
    %c0_i32 = arith.constant 0 : i32
    return %arg0, %arg1 : i32, i32
  }
}

module attributes {stable_mosaic.version = 11 : i64} {
  func.func @_linear_kernel(%arg0: i32, %arg1: i32, %arg2: i32, %arg3: memref<16x256xbf16, #tpu.memory_space<vmem>>, %arg4: memref<256x128xbf16, #tpu.memory_space<vmem>>, %arg5: memref<1x128xf32, #tpu.memory_space<vmem>>, %arg6: memref<16x128xf32, #tpu.memory_space<vmem>>, %arg7: memref<16x128xf32, #tpu.memory_space<vmem>>) attributes {dimension_semantics = [#tpu.dimension_semantics<parallel>, #tpu.dimension_semantics<parallel>, #tpu.dimension_semantics<arbitrary>], iteration_bounds = array<i64: 1, 1, 1>, scalar_prefetch = 0 : i64, scratch_operands = 1 : i64, tpu.core_type = #tpu.core_type<tc>, window_params = [{transform_indices = @transform_0, window_bounds = array<i64: 16, 256>}, {transform_indices = @transform_1, window_bounds = array<i64: 256, 128>}, {transform_indices = @transform_2, window_bounds = array<i64: 1, 128>}, {transform_indices = @transform_3, window_bounds = array<i64: 16, 128>}]} {
    %c0_i32 = arith.constant 0 : i32
    %0 = arith.cmpi eq, %arg2, %c0_i32 : i32
    %1 = arith.extui %0 : i1 to i32
    %c0_i32_0 = arith.constant 0 : i32
    %2 = arith.cmpi ne, %1, %c0_i32_0 : i32
    scf.if %2 {
      %cst_10 = arith.constant 0.000000e+00 : f32
      %12 = vector.broadcast %cst_10 : f32 to vector<16x128xf32>
      %c0_11 = arith.constant 0 : index
      %c0_12 = arith.constant 0 : index
      %13 = vector.load %arg7[%c0_11, %c0_12] : memref<16x128xf32, #tpu.memory_space<vmem>>, vector<16x128xf32>
      tpu.vector_store %arg7[%c0_11, %c0_12], %12 {strides = array<i32>} : memref<16x128xf32, #tpu.memory_space<vmem>>, vector<16x128xf32>,
    } else {
    }
    %c0 = arith.constant 0 : index
    %c0_1 = arith.constant 0 : index
    %3 = vector.load %arg7[%c0, %c0_1] : memref<16x128xf32, #tpu.memory_space<vmem>>, vector<16x128xf32>
    %c0_2 = arith.constant 0 : index
    %c0_3 = arith.constant 0 : index
    %4 = vector.load %arg3[%c0_2, %c0_3] : memref<16x256xbf16, #tpu.memory_space<vmem>>, vector<16x256xbf16>
    %c0_4 = arith.constant 0 : index
    %c0_5 = arith.constant 0 : index
    %5 = vector.load %arg4[%c0_4, %c0_5] : memref<256x128xbf16, #tpu.memory_space<vmem>>, vector<256x128xbf16>
    %cst = arith.constant dense<0.000000e+00> : vector<16x128xf32>
    %6 = tpu.matmul %4, %5, %cst {dimension_numbers = #tpu.dot_dimension_numbers<[1], [0], [0], [1], [0, 0, 1, 1], [], []>} : vector<16x256xbf16>, vector<256x128xbf16>, vector<16x128xf32> -> vector<16x128xf32>
    %7 = arith.addf %3, %6 : vector<16x128xf32>
    %c0_6 = arith.constant 0 : index
    %c0_7 = arith.constant 0 : index
    %8 = vector.load %arg7[%c0_6, %c0_7] : memref<16x128xf32, #tpu.memory_space<vmem>>, vector<16x128xf32>
    tpu.vector_store %arg7[%c0_6, %c0_7], %7 {strides = array<i32>} : memref<16x128xf32, #tpu.memory_space<vmem>>, vector<16x128xf32>,
    %c0_i32_8 = arith.constant 0 : i32
    %9 = arith.cmpi eq, %arg2, %c0_i32_8 : i32
    %10 = arith.extui %9 : i1 to i32
    %c0_i32_9 = arith.constant 0 : i32
    %11 = arith.cmpi ne, %10, %c0_i32_9 : i32
    scf.if %11 {
      %c0_10 = arith.constant 0 : index
      %c0_11 = arith.constant 0 : index
      %12 = vector.load %arg7[%c0_10, %c0_11] : memref<16x128xf32, #tpu.memory_space<vmem>>, vector<16x128xf32>
      %c0_12 = arith.constant 0 : index
      %c0_13 = arith.constant 0 : index
      %13 = vector.load %arg5[%c0_12, %c0_13] : memref<1x128xf32, #tpu.memory_space<vmem>>, vector<1x128xf32>
      %14 = vector.broadcast %13 : vector<1x128xf32> to vector<16x128xf32>
      %15 = arith.addf %12, %14 : vector<16x128xf32>
      %cst_14 = arith.constant 0.000000e+00 : f32
      %16 = vector.broadcast %cst_14 : f32 to vector<16x128xf32>
      %17 = arith.maximumf %15, %16 : vector<16x128xf32>
      %c0_15 = arith.constant 0 : index
      %c0_16 = arith.constant 0 : index
      %18 = vector.load %arg6[%c0_15, %c0_16] : memref<16x128xf32, #tpu.memory_space<vmem>>, vector<16x128xf32>
      tpu.vector_store %arg6[%c0_15, %c0_16], %17 {strides = array<i32>} : memref<16x128xf32, #tpu.memory_space<vmem>>, vector<16x128xf32>,
    } else {
    }
    return
  }
  func.func @transform_0(%arg0: i32, %arg1: i32, %arg2: i32) -> (i32, i32) {
    %c0_i32 = arith.constant 0 : i32
    return %arg0, %arg2 : i32, i32
  }
  func.func @transform_1(%arg0: i32, %arg1: i32, %arg2: i32) -> (i32, i32) {
    %c0_i32 = arith.constant 0 : i32
    return %arg2, %arg1 : i32, i32
  }
  func.func @transform_2(%arg0: i32, %arg1: i32, %arg2: i32) -> (i32, i32) {
    %c0_i32 = arith.constant 0 : i32
    %c0_i32_0 = arith.constant 0 : i32
    return %c0_i32, %arg1 : i32, i32
  }
  func.func @transform_3(%arg0: i32, %arg1: i32, %arg2: i32) -> (i32, i32) {
    %c0_i32 = arith.constant 0 : i32
    return %arg0, %arg1 : i32, i32
  }
}

module attributes {stable_mosaic.version = 11 : i64} {
  func.func @_output_softmax_kernel(%arg0: i32, %arg1: i32, %arg2: i32, %arg3: memref<16x128xbf16, #tpu.memory_space<vmem>>, %arg4: memref<128x128xbf16, #tpu.memory_space<vmem>>, %arg5: memref<1x128xf32, #tpu.memory_space<vmem>>, %arg6: memref<16x128xf32, #tpu.memory_space<vmem>>, %arg7: memref<16x128xf32, #tpu.memory_space<vmem>>, %arg8: memref<16x128xf32, #tpu.memory_space<vmem>>) attributes {dimension_semantics = [#tpu.dimension_semantics<parallel>, #tpu.dimension_semantics<parallel>, #tpu.dimension_semantics<arbitrary>], iteration_bounds = array<i64: 1, 6, 1>, scalar_prefetch = 0 : i64, scratch_operands = 1 : i64, tpu.core_type = #tpu.core_type<tc>, window_params = [{transform_indices = @transform_0, window_bounds = array<i64: 16, 128>}, {transform_indices = @transform_1, window_bounds = array<i64: 128, 128>}, {transform_indices = @transform_2, window_bounds = array<i64: 1, 128>}, {transform_indices = @transform_3, window_bounds = array<i64: 16, 128>}, {transform_indices = @transform_4, window_bounds = array<i64: 16, 128>}]} {
    %c0_i32 = arith.constant 0 : i32
    %0 = arith.cmpi eq, %arg2, %c0_i32 : i32
    %1 = arith.extui %0 : i1 to i32
    %c0_i32_0 = arith.constant 0 : i32
    %2 = arith.cmpi ne, %1, %c0_i32_0 : i32
    scf.if %2 {
      %cst_10 = arith.constant 0.000000e+00 : f32
      %12 = vector.broadcast %cst_10 : f32 to vector<16x128xf32>
      %c0_11 = arith.constant 0 : index
      %c0_12 = arith.constant 0 : index
      %13 = vector.load %arg8[%c0_11, %c0_12] : memref<16x128xf32, #tpu.memory_space<vmem>>, vector<16x128xf32>
      tpu.vector_store %arg8[%c0_11, %c0_12], %12 {strides = array<i32>} : memref<16x128xf32, #tpu.memory_space<vmem>>, vector<16x128xf32>,
    } else {
    }
    %c0 = arith.constant 0 : index
    %c0_1 = arith.constant 0 : index
    %3 = vector.load %arg8[%c0, %c0_1] : memref<16x128xf32, #tpu.memory_space<vmem>>, vector<16x128xf32>
    %c0_2 = arith.constant 0 : index
    %c0_3 = arith.constant 0 : index
    %4 = vector.load %arg3[%c0_2, %c0_3] : memref<16x128xbf16, #tpu.memory_space<vmem>>, vector<16x128xbf16>
    %c0_4 = arith.constant 0 : index
    %c0_5 = arith.constant 0 : index
    %5 = vector.load %arg4[%c0_4, %c0_5] : memref<128x128xbf16, #tpu.memory_space<vmem>>, vector<128x128xbf16>
    %cst = arith.constant dense<0.000000e+00> : vector<16x128xf32>
    %6 = tpu.matmul %4, %5, %cst {dimension_numbers = #tpu.dot_dimension_numbers<[1], [0], [0], [1], [0, 0, 1, 1], [], []>} : vector<16x128xbf16>, vector<128x128xbf16>, vector<16x128xf32> -> vector<16x128xf32>
    %7 = arith.addf %3, %6 : vector<16x128xf32>
    %c0_6 = arith.constant 0 : index
    %c0_7 = arith.constant 0 : index
    %8 = vector.load %arg8[%c0_6, %c0_7] : memref<16x128xf32, #tpu.memory_space<vmem>>, vector<16x128xf32>
    tpu.vector_store %arg8[%c0_6, %c0_7], %7 {strides = array<i32>} : memref<16x128xf32, #tpu.memory_space<vmem>>, vector<16x128xf32>,
    %c0_i32_8 = arith.constant 0 : i32
    %9 = arith.cmpi eq, %arg2, %c0_i32_8 : i32
    %10 = arith.extui %9 : i1 to i32
    %c0_i32_9 = arith.constant 0 : i32
    %11 = arith.cmpi ne, %10, %c0_i32_9 : i32
    scf.if %11 {
      %c0_10 = arith.constant 0 : index
      %c0_11 = arith.constant 0 : index
      %12 = vector.load %arg8[%c0_10, %c0_11] : memref<16x128xf32, #tpu.memory_space<vmem>>, vector<16x128xf32>
      %c0_12 = arith.constant 0 : index
      %c0_13 = arith.constant 0 : index
      %13 = vector.load %arg5[%c0_12, %c0_13] : memref<1x128xf32, #tpu.memory_space<vmem>>, vector<1x128xf32>
      %14 = vector.broadcast %13 : vector<1x128xf32> to vector<16x128xf32>
      %15 = arith.addf %12, %14 : vector<16x128xf32>
      %c0_14 = arith.constant 0 : index
      %c0_15 = arith.constant 0 : index
      %16 = vector.load %arg6[%c0_14, %c0_15] : memref<16x128xf32, #tpu.memory_space<vmem>>, vector<16x128xf32>
      tpu.vector_store %arg6[%c0_14, %c0_15], %15 {strides = array<i32>} : memref<16x128xf32, #tpu.memory_space<vmem>>, vector<16x128xf32>,
      %cst_16 = arith.constant dense<0xFF800000> : vector<16xf32>
      %17 = vector.multi_reduction <maximumf>, %15, %cst_16 [1] : vector<16x128xf32> to vector<16xf32>
      %18 = vector.shape_cast %17 : vector<16xf32> to vector<16x1xf32>
      %19 = vector.broadcast %18 : vector<16x1xf32> to vector<16x128xf32>
      %20 = arith.subf %15, %19 : vector<16x128xf32>
      %21 = math.exp %20 : vector<16x128xf32>
      %cst_17 = arith.constant dense<0.000000e+00> : vector<16xf32>
      %22 = vector.multi_reduction <add>, %21, %cst_17 [1] : vector<16x128xf32> to vector<16xf32>
      %23 = vector.shape_cast %22 : vector<16xf32> to vector<16x1xf32>
      %24 = tpu.reciprocal %23 {approx = true} : vector<16x1xf32> -> vector<16x1xf32>
      %25 = vector.broadcast %24 : vector<16x1xf32> to vector<16x128xf32>
      %26 = arith.mulf %21, %25 : vector<16x128xf32>
      %c0_18 = arith.constant 0 : index
      %c0_19 = arith.constant 0 : index
      %27 = vector.load %arg7[%c0_18, %c0_19] : memref<16x128xf32, #tpu.memory_space<vmem>>, vector<16x128xf32>
      tpu.vector_store %arg7[%c0_18, %c0_19], %26 {strides = array<i32>} : memref<16x128xf32, #tpu.memory_space<vmem>>, vector<16x128xf32>,
    } else {
    }
    return
  }
  func.func @transform_0(%arg0: i32, %arg1: i32, %arg2: i32) -> (i32, i32) {
    %c0_i32 = arith.constant 0 : i32
    return %arg0, %arg2 : i32, i32
  }
  func.func @transform_1(%arg0: i32, %arg1: i32, %arg2: i32) -> (i32, i32) {
    %c0_i32 = arith.constant 0 : i32
    return %arg2, %arg1 : i32, i32
  }
  func.func @transform_2(%arg0: i32, %arg1: i32, %arg2: i32) -> (i32, i32) {
    %c0_i32 = arith.constant 0 : i32
    %c0_i32_0 = arith.constant 0 : i32
    return %c0_i32, %arg1 : i32, i32
  }
  func.func @transform_3(%arg0: i32, %arg1: i32, %arg2: i32) -> (i32, i32) {
    %c0_i32 = arith.constant 0 : i32
    return %arg0, %arg1 : i32, i32
  }
  func.func @transform_4(%arg0: i32, %arg1: i32, %arg2: i32) -> (i32, i32) {
    %c0_i32 = arith.constant 0 : i32
    return %arg0, %arg1 : i32, i32
  }
}

</mosaic_0001>

<bundles_post_ra>
// kernel: conv_encoder_categorical_forward.4
= control target key start
LH: loop header
LB: loop body
LE: loop exit
PB: predicated region body
PF: predicated region fallthrough
CT: control target
= control target key end

     0   :  { %s602_s1 = inlined_call_operand.vmem [shape: bf16[128,128], index: 1, kind: input, shape index: {}]   ;;  %s603_s0 = inlined_call_operand.vmem [shape: bf16[128,128], index: 0, kind: input, shape index: {}]   ;;  %s604_s2 = inlined_call_operand.vmem [shape: f32[1,128], index: 2, kind: input, shape index: {}]   ;;  %s605_s3 = inlined_call_operand.vmem [shape: f32[128,128], index: 3, kind: output, shape index: {}]  }
   0x1   :  { %v467_v0 = vld [vmem:[%s602_s1 + $0x38] sm:$0xff]   ;;  %v468_v1 = vld [vmem:[%s602_s1 + $0x30] sm:$0xff]   ;;  %v469_v2 = vld [vmem:[%s602_s1 + $0x28] sm:$0xff]  }
   0x2   :  { %419 = vmatprep.subr.bf16.mxu0 %v467_v0  ;;  %451 = vmatprep.subr.bf16.mxu1 %v467_v0  ;;  %v470_v3 = vld [vmem:[%s602_s1 + $0x20] sm:$0xff]   ;;  %v471_v6 = vld [vmem:[%s602_s1 + $0x18] sm:$0xff]   ;;  %v472_v7 = vld [vmem:[%s602_s1 + $0x10] sm:$0xff]  }
   0x3   :  { %420 = vmatpush3.bf16.msra.mxu0 %v467_v0  ;;  %459 = vmatpush3.bf16.msra.mxu1 %v467_v0  ;;  %v475_v4 = vld [vmem:[%s603_s0] sm:$0xff]   ;;  %v473_v8 = vld [vmem:[%s602_s1 + $0x8] sm:$0xff]   ;;  %v479_v12 = vld [vmem:[%s603_s0 + $0x10] sm:$0xff]  }
   0x4   :  { %421 = vmatprep.subr.bf16.mxu0 %v468_v1  ;;  %452 = vmatprep.subr.bf16.mxu1 %v468_v1  ;;  %v476_v5 = vld [vmem:[%s603_s0 + $0x20] sm:$0xff]   ;;  %v477_v10 = vld [vmem:[%s603_s0 + $0x8] sm:$0xff]   ;;  %v480_v13 = vld [vmem:[%s603_s0 + $0x30] sm:$0xff]  }
   0x5   :  { %435 = vmatprep.mubr.bf16.mxu0 %v475_v4  ;;  %443 = vmatprep.mubr.bf16.mxu1 %v476_v5  ;;  %v474_v9 = vld [vmem:[%s602_s1] sm:$0xff]   ;;  %v478_v11 = vld [vmem:[%s603_s0 + $0x28] sm:$0xff]   ;;  %v481_v14 = vld [vmem:[%s603_s0 + $0x18] sm:$0xff]  }
   0x6   :  { %v482_v15 = vld [vmem:[%s603_s0 + $0x38] sm:$0xff]   ;;  %v402_v16 = vld [vmem:[%s604_s2] ss:$0 sm:$0xff] }
   0x7   :  { %422 = vmatpush3.bf16.msra.mxu0 %v468_v1  ;;  %460 = vmatpush3.bf16.msra.mxu1 %v468_v1 }
   0x8   :  { %423 = vmatprep.subr.bf16.mxu0 %v469_v2  ;;  %453 = vmatprep.subr.bf16.mxu1 %v469_v2 }
   0xb   :  { %424 = vmatpush3.bf16.msra.mxu0 %v469_v2  ;;  %461 = vmatpush3.bf16.msra.mxu1 %v469_v2 }
   0xc   :  { %425 = vmatprep.subr.bf16.mxu0 %v470_v3  ;;  %454 = vmatprep.subr.bf16.mxu1 %v470_v3 }
   0xf   :  { %426 = vmatpush3.bf16.msra.mxu0 %v470_v3  ;;  %462 = vmatpush3.bf16.msra.mxu1 %v470_v3 }
  0x10   :  { %427 = vmatprep.subr.bf16.mxu0 %v471_v6  ;;  %455 = vmatprep.subr.bf16.mxu1 %v471_v6 }
  0x13   :  { %428 = vmatpush3.bf16.msra.mxu0 %v471_v6  ;;  %463 = vmatpush3.bf16.msra.mxu1 %v471_v6 }
  0x14   :  { %429 = vmatprep.subr.bf16.mxu0 %v472_v7  ;;  %456 = vmatprep.subr.bf16.mxu1 %v472_v7 }
  0x17   :  { %430 = vmatpush3.bf16.msra.mxu0 %v472_v7  ;;  %464 = vmatpush3.bf16.msra.mxu1 %v472_v7 }
  0x18   :  { %431 = vmatprep.subr.bf16.mxu0 %v473_v8  ;;  %457 = vmatprep.subr.bf16.mxu1 %v473_v8 }
  0x1b   :  { %432 = vmatpush3.bf16.msra.mxu0 %v473_v8  ;;  %465 = vmatpush3.bf16.msra.mxu1 %v473_v8 }
  0x1c   :  { %433 = vmatprep.subr.bf16.mxu0 %v474_v9  ;;  %458 = vmatprep.subr.bf16.mxu1 %v474_v9 }
  0x1f   :  { %434 = vmatpush3.bf16.msra.mxu0 %v474_v9  ;;  %466 = vmatpush3.bf16.msra.mxu1 %v474_v9 }
  0x22   :  { %436 = vmatmul.mubr.bf16.vlgmr.msra.gmra.mxu0 %v477_v10  ;;  %444 = vmatmul.mubr.bf16.vlgmr.msra.gmra.mxu1 %v478_v11 }
  0x23   :  { %439 = vmatprep.mubr.bf16.mxu0 %v479_v12  ;;  %447 = vmatprep.mubr.bf16.mxu1 %v480_v13 }
  0x2a   :  { %440 = vmatmul.mubr.bf16.gmra.mxu0 %v481_v14  ;;  %448 = vmatmul.mubr.bf16.gmra.mxu1 %v482_v15 }
  0xe2   :  { %v437_v17 = vpop.f32.mrf.mxu0  ;;  %v445_v18 = vpop.f32.mrf.mxu1 }
  0xe3   :  { %v336_v19 = vadd.f32 %v437_v17, %v402_v16  ;;  %v344_v20 = vadd.f32 %v445_v18, %v402_v16 }
  0xe4   :  { %v213_v21 = vpop.f32.mrf.mxu0  ;;  %v245_v22 = vpop.f32.mrf.mxu1 }
  0xe5   :  { %v352_v23 = vmax.f32 %v336_v19, 0.0  ;;  %v360_v24 = vmax.f32 %v344_v20, 0.0  ;;  %v334_v25 = vadd.f32 %v402_v16, %v213_v21  ;;  %v342_v26 = vadd.f32 %v402_v16, %v245_v22 }
  0xe6   :  { %v438_v27 = vpop.f32.mrf.mxu0  ;;  %v446_v28 = vpop.f32.mrf.mxu1 }
  0xe7   :  { %368 = vst [vmem:[%s605_s3 + $0x10] sm:$0xff] %v352_v23  ;;  %376 = vst [vmem:[%s605_s3 + $0x50] sm:$0xff] %v360_v24  ;;  %v350_v29 = vmax.f32 %v334_v25, 0.0  ;;  %v358_v30 = vmax.f32 %v342_v26, 0.0  ;;  %v337_v31 = vadd.f32 %v438_v27, %v402_v16  ;;  %v345_v32 = vadd.f32 %v446_v28, %v402_v16 }
  0xe8   :  { %v216_v33 = vpop.f32.mrf.mxu0  ;;  %v248_v34 = vpop.f32.mrf.mxu1 }
  0xe9   :  { %366 = vst [vmem:[%s605_s3] sm:$0xff] %v350_v29  ;;  %374 = vst [vmem:[%s605_s3 + $0x40] sm:$0xff] %v358_v30  ;;  %v353_v35 = vmax.f32 %v337_v31, 0.0  ;;  %v361_v36 = vmax.f32 %v345_v32, 0.0  ;;  %v335_v37 = vadd.f32 %v402_v16, %v216_v33  ;;  %v343_v38 = vadd.f32 %v402_v16, %v248_v34 }
  0xea   :  { %v441_v39 = vpop.f32.mrf.mxu0  ;;  %v449_v40 = vpop.f32.mrf.mxu1 }
  0xeb   :  { %369 = vst [vmem:[%s605_s3 + $0x18] sm:$0xff] %v353_v35  ;;  %377 = vst [vmem:[%s605_s3 + $0x58] sm:$0xff] %v361_v36  ;;  %v351_v41 = vmax.f32 %v335_v37, 0.0  ;;  %v359_v42 = vmax.f32 %v343_v38, 0.0  ;;  %v340_v43 = vadd.f32 %v441_v39, %v402_v16  ;;  %v348_v44 = vadd.f32 %v449_v40, %v402_v16 }
  0xec   :  { %v229_v45 = vpop.f32.mrf.mxu0  ;;  %v261_v46 = vpop.f32.mrf.mxu1 }
  0xed   :  { %367 = vst [vmem:[%s605_s3 + $0x8] sm:$0xff] %v351_v41  ;;  %375 = vst [vmem:[%s605_s3 + $0x48] sm:$0xff] %v359_v42  ;;  %v356_v47 = vmax.f32 %v340_v43, 0.0  ;;  %v364_v48 = vmax.f32 %v348_v44, 0.0  ;;  %v338_v49 = vadd.f32 %v402_v16, %v229_v45  ;;  %v346_v50 = vadd.f32 %v402_v16, %v261_v46 }
  0xee   :  { %v442_v51 = vpop.f32.mrf.mxu0  ;;  %v450_v52 = vpop.f32.mrf.mxu1 }
  0xef   :  { %372 = vst [vmem:[%s605_s3 + $0x30] sm:$0xff] %v356_v47  ;;  %380 = vst [vmem:[%s605_s3 + $0x70] sm:$0xff] %v364_v48  ;;  %v354_v53 = vmax.f32 %v338_v49, 0.0  ;;  %v362_v54 = vmax.f32 %v346_v50, 0.0  ;;  %v341_v55 = vadd.f32 %v442_v51, %v402_v16  ;;  %v349_v56 = vadd.f32 %v450_v52, %v402_v16 }
  0xf0   :  { %v232_v57 = vpop.f32.mrf.mxu0  ;;  %v264_v58 = vpop.f32.mrf.mxu1 }
  0xf1   :  { %370 = vst [vmem:[%s605_s3 + $0x20] sm:$0xff] %v354_v53  ;;  %378 = vst [vmem:[%s605_s3 + $0x60] sm:$0xff] %v362_v54  ;;  %v357_v59 = vmax.f32 %v341_v55, 0.0  ;;  %v365_v60 = vmax.f32 %v349_v56, 0.0  ;;  %v339_v61 = vadd.f32 %v402_v16, %v232_v57  ;;  %v347_v62 = vadd.f32 %v402_v16, %v264_v58 }
  0xf3   :  { %373 = vst [vmem:[%s605_s3 + $0x38] sm:$0xff] %v357_v59  ;;  %381 = vst [vmem:[%s605_s3 + $0x78] sm:$0xff] %v365_v60  ;;  %v355_v63 = vmax.f32 %v339_v61, 0.0  ;;  %v363_v0 = vmax.f32 %v347_v62, 0.0 }
  0xf5   :  { %371 = vst [vmem:[%s605_s3 + $0x28] sm:$0xff] %v355_v63  ;;  %379 = vst [vmem:[%s605_s3 + $0x68] sm:$0xff] %v363_v0 }

// kernel: conv_encoder_categorical_forward.5
= control target key start
LH: loop header
LB: loop body
LE: loop exit
PB: predicated region body
PF: predicated region fallthrough
CT: control target
= control target key end

     0   :  { %s310_s1 = inlined_call_operand.vmem [shape: bf16[128,128], index: 1, kind: input, shape index: {}]   ;;  %s311_s0 = inlined_call_operand.vmem [shape: bf16[32,128], index: 0, kind: input, shape index: {}]   ;;  %s312_s2 = inlined_call_operand.vmem [shape: f32[1,128], index: 2, kind: input, shape index: {}]   ;;  %s313_s3 = inlined_call_operand.vmem [shape: f32[32,128], index: 3, kind: output, shape index: {}]  }
   0x1   :  { %v235_v0 = vld [vmem:[%s310_s1 + $0x38] sm:$0xff]   ;;  %v236_v1 = vld [vmem:[%s310_s1 + $0x30] sm:$0xff]   ;;  %v237_v2 = vld [vmem:[%s310_s1 + $0x28] sm:$0xff]  }
   0x2   :  { %215 = vmatprep.subr.bf16.mxu0 %v235_v0  ;;  %v238_v3 = vld [vmem:[%s310_s1 + $0x20] sm:$0xff]   ;;  %v239_v5 = vld [vmem:[%s310_s1 + $0x18] sm:$0xff]   ;;  %v240_v6 = vld [vmem:[%s310_s1 + $0x10] sm:$0xff]  }
   0x3   :  { %216 = vmatpush3.bf16.msra.mxu0 %v235_v0  ;;  %v243_v4 = vld [vmem:[%s311_s0] sm:$0xff]   ;;  %v241_v7 = vld [vmem:[%s310_s1 + $0x8] sm:$0xff]  }
   0x4   :  { %217 = vmatprep.subr.bf16.mxu0 %v236_v1  ;;  %231 = vmatprep.mubr.bf16.mxu0 %v243_v4  ;;  %v242_v8 = vld [vmem:[%s310_s1] sm:$0xff]   ;;  %v244_v9 = vld [vmem:[%s311_s0 + $0x8] sm:$0xff]  }
   0x5   :  { %v204_v10 = vld [vmem:[%s312_s2] ss:$0 sm:$0xff] }
   0x7   :  { %218 = vmatpush3.bf16.msra.mxu0 %v236_v1 }
   0x8   :  { %219 = vmatprep.subr.bf16.mxu0 %v237_v2 }
   0xb   :  { %220 = vmatpush3.bf16.msra.mxu0 %v237_v2 }
   0xc   :  { %221 = vmatprep.subr.bf16.mxu0 %v238_v3 }
   0xf   :  { %222 = vmatpush3.bf16.msra.mxu0 %v238_v3 }
  0x10   :  { %223 = vmatprep.subr.bf16.mxu0 %v239_v5 }
  0x13   :  { %224 = vmatpush3.bf16.msra.mxu0 %v239_v5 }
  0x14   :  { %225 = vmatprep.subr.bf16.mxu0 %v240_v6 }
  0x17   :  { %226 = vmatpush3.bf16.msra.mxu0 %v240_v6 }
  0x18   :  { %227 = vmatprep.subr.bf16.mxu0 %v241_v7 }
  0x1b   :  { %228 = vmatpush3.bf16.msra.mxu0 %v241_v7 }
  0x1c   :  { %229 = vmatprep.subr.bf16.mxu0 %v242_v8 }
  0x1f   :  { %230 = vmatpush3.bf16.msra.mxu0 %v242_v8 }
  0x22   :  { %232 = vmatmul.mubr.bf16.vlgmr.msra.gmra.mxu0 %v244_v9 }
  0xe2   :  { %v233_v11 = vpop.f32.mrf.mxu0 }
  0xe3   :  { %v180_v12 = vadd.f32 %v233_v11, %v204_v10 }
  0xe4   :  { %v141_v13 = vpop.f32.mrf.mxu0 }
  0xe5   :  { %v184_v14 = vmax.f32 %v180_v12, 0.0  ;;  %v178_v15 = vadd.f32 %v204_v10, %v141_v13 }
  0xe6   :  { %v234_v16 = vpop.f32.mrf.mxu0 }
  0xe7   :  { %188 = vst [vmem:[%s313_s3 + $0x10] sm:$0xff] %v184_v14  ;;  %v182_v17 = vmax.f32 %v178_v15, 0.0  ;;  %v181_v18 = vadd.f32 %v234_v16, %v204_v10 }
  0xe8   :  { %v144_v19 = vpop.f32.mrf.mxu0 }
  0xe9   :  { %186 = vst [vmem:[%s313_s3] sm:$0xff] %v182_v17  ;;  %v185_v20 = vmax.f32 %v181_v18, 0.0  ;;  %v179_v21 = vadd.f32 %v204_v10, %v144_v19 }
  0xeb   :  { %189 = vst [vmem:[%s313_s3 + $0x18] sm:$0xff] %v185_v20  ;;  %v183_v22 = vmax.f32 %v179_v21, 0.0 }
  0xed   :  { %187 = vst [vmem:[%s313_s3 + $0x8] sm:$0xff] %v183_v22 }

// kernel: conv_encoder_categorical_forward.6
= control target key start
LH: loop header
LB: loop body
LE: loop exit
PB: predicated region body
PF: predicated region fallthrough
CT: control target
= control target key end

     0   :  { %s373_s1 = inlined_call_operand.vmem [shape: bf16[256,128], index: 1, kind: input, shape index: {}]   ;;  %s374_s0 = inlined_call_operand.vmem [shape: bf16[16,256], index: 0, kind: input, shape index: {}]   ;;  %s375_s2 = inlined_call_operand.vmem [shape: f32[1,128], index: 2, kind: input, shape index: {}]   ;;  %s376_s3 = inlined_call_operand.vmem [shape: f32[16,128], index: 3, kind: output, shape index: {}]  }
   0x1   :  { %v271_v0 = vld [vmem:[%s373_s1 + $0x78] sm:$0xff]   ;;  %v273_v2 = vld [vmem:[%s373_s1 + $0x70] sm:$0xff]   ;;  %v275_v4 = vld [vmem:[%s373_s1 + $0x68] sm:$0xff]  }
   0x2   :  { %v272_v1 = vld [vmem:[%s373_s1 + $0x38] sm:$0xff]   ;;  %249 = vmatprep.subr.bf16.mxu0 %v271_v0  ;;  %v274_v3 = vld [vmem:[%s373_s1 + $0x30] sm:$0xff]   ;;  %v276_v5 = vld [vmem:[%s373_s1 + $0x28] sm:$0xff]  }
   0x3   :  { %250 = vmatpush3.bf16.msra.mxu0 %v272_v1  ;;  %v277_v6 = vld [vmem:[%s373_s1 + $0x60] sm:$0xff]   ;;  %v279_v8 = vld [vmem:[%s373_s1 + $0x58] sm:$0xff]   ;;  %v281_v10 = vld [vmem:[%s373_s1 + $0x50] sm:$0xff]  }
   0x4   :  { %251 = vmatprep.subr.bf16.mxu0 %v273_v2  ;;  %v278_v7 = vld [vmem:[%s373_s1 + $0x20] sm:$0xff]   ;;  %v280_v9 = vld [vmem:[%s373_s1 + $0x18] sm:$0xff]   ;;  %v282_v12 = vld [vmem:[%s373_s1 + $0x10] sm:$0xff]  }
   0x5   :  { %v289_v11 = vld [vmem:[%s374_s0 + $0x4] ss:$8 sps:$4 sm:$0xff]   ;;  %v287_v17 = vld [vmem:[%s374_s0] ss:$8 sps:$4 sm:$0xff]  }
   0x6   :  { %195 = vmatprep.mubr.bf16.mxu0 %v289_v11  ;;  %v283_v13 = vld [vmem:[%s373_s1 + $0x48] sm:$0xff]   ;;  %v285_v15 = vld [vmem:[%s373_s1 + $0x40] sm:$0xff]  }
   0x7   :  { %252 = vmatpush3.bf16.msra.mxu0 %v274_v3  ;;  %v284_v14 = vld [vmem:[%s373_s1 + $0x8] sm:$0xff]   ;;  %v286_v16 = vld [vmem:[%s373_s1] sm:$0xff]  }
   0x8   :  { %253 = vmatprep.subr.bf16.mxu0 %v275_v4  ;;  %v248_v20 = vld [vmem:[%s375_s2] ss:$0 sm:$0xff] }
   0xb   :  { %254 = vmatpush3.bf16.msra.mxu0 %v276_v5 }
   0xc   :  { %255 = vmatprep.subr.bf16.mxu0 %v277_v6 }
   0xf   :  { %256 = vmatpush3.bf16.msra.mxu0 %v278_v7 }
  0x10   :  { %257 = vmatprep.subr.bf16.mxu0 %v279_v8 }
  0x13   :  { %258 = vmatpush3.bf16.msra.mxu0 %v280_v9 }
  0x14   :  { %259 = vmatprep.subr.bf16.mxu0 %v281_v10 }
  0x17   :  { %260 = vmatpush3.bf16.msra.mxu0 %v282_v12 }
  0x18   :  { %261 = vmatprep.subr.bf16.mxu0 %v283_v13 }
  0x1b   :  { %262 = vmatpush3.bf16.msra.mxu0 %v284_v14 }
  0x1c   :  { %263 = vmatprep.subr.bf16.mxu0 %v285_v15 }
  0x1f   :  { %264 = vmatpush3.bf16.msra.mxu0 %v286_v16 }
  0x22   :  { %196 = vmatmul.mubr.bf16.vlgmr.msra.gmra.mxu0 %v287_v17 }
  0xe2   :  { %v265_v18 = vpop.f32.mrf.mxu0 }
  0xe4   :  { %v266_v19 = vpop.f32.mrf.mxu0 }
  0xe5   :  { %v267_v21 = vadd.f32 %v266_v19, %v265_v18 }
  0xe6   :  { %v268_v22 = vpop.f32.mrf.mxu0 }
  0xe7   :  { %v220_v23 = vadd.f32 %v267_v21, %v248_v20 }
  0xe8   :  { %v269_v24 = vpop.f32.mrf.mxu0 }
  0xe9   :  { %v222_v25 = vmax.f32 %v220_v23, 0.0  ;;  %v270_v26 = vadd.f32 %v269_v24, %v268_v22 }
  0xeb   :  { %224 = vst [vmem:[%s376_s3] sm:$0xff] %v222_v25  ;;  %v221_v27 = vadd.f32 %v270_v26, %v248_v20 }
  0xed   :  { %v223_v28 = vmax.f32 %v221_v27, 0.0 }
  0xef   :  { %225 = vst [vmem:[%s376_s3 + $0x8] sm:$0xff] %v223_v28 }

// kernel: conv_encoder_categorical_forward.7
= control target key start
LH: loop header
LB: loop body
LE: loop exit
PB: predicated region body
PF: predicated region fallthrough
CT: control target
= control target key end

     0   :  { %s951_s15 = smov 0   ;;  %s953_s16 = smov 0   ;;  %s1069_s0 = inlined_call_operand.vmem [shape: bf16[16,128], index: 0, kind: input, shape index: {}]   ;;  %s1070_s1 = inlined_call_operand.vmem [shape: bf16[128,768], index: 1, kind: input, shape index: {}]   ;;  %s1071_s2 = inlined_call_operand.vmem [shape: f32[1,768], index: 2, kind: input, shape index: {}]   ;;  %s1072_s3 = inlined_call_operand.vmem [shape: f32[16,768], index: 3, kind: output, shape index: {0}]   ;;  %s1073_s4 = inlined_call_operand.vmem [shape: f32[16,768], index: 4, kind: output, shape index: {1}]  }
   0x1   :  { %s955_s17 = smov 0   ;;  %s957_s18 = smov 0  }
   0x2   :  { %s959_s19 = smov 0  }
   0x3 LB: > { %s30_s20 = sadd.s32 1, %s918_s18  ;;  %s769_s21 = sadd.s32 4294967295, %s922_s19   ;;  %s922_s19 = sphi %s959_s19, %s15_s19   ;;  %s918_s18 = sphi %s957_s18, %s1078_s18   ;;  %s914_s17 = sphi %s955_s17, %s1077_s17   ;;  %s910_s16 = sphi %s953_s16, %s1076_s16   ;;  %s906_s15 = sphi %s951_s15, %s1075_s15  }
   0x4   : > { %p32_p0 = scmp.ge.s32.totalorder %s30_s20, 6  ;;  %p78_p1 = scmp.ne.s32.totalorder %s910_s16, %s906_s15 }
   0x5   : > { %p79_p2 = scmp.eq.s32.totalorder %s922_s19, 0  ;;  %p136_p4 = scmp.eq.s32.totalorder %s769_s21, 5 }
   0x6   : > { %s1080_s20 = smov (%p32_p0, %s30_s20), 0  ;;  %s71_s23 = sadd.s32 1, %s910_s16 }
   0x7   : > { %p80_p3 = por %p79_p2, %p78_p1  ;;  %s67_s22 = ssub.s32 %s918_s18, %s1080_s20 }
   0x8   : > { %p69_p5 = scmp.eq.s32.totalorder %s67_s22, 0  ;;  %p986_p6 = por %p136_p4, %p78_p1 }
   0x9   : > { %p773_p7 = scmp.ge.s32.totalorder %s922_s19, 6 }
   0xa   : > { %s991_s25 = scalar_select %p69_p5, %s910_s16, %s71_s23  }
   0xb   : > { %198 = sbr.rel (%p773_p7) target bundleno = 30 (0x1e), region = 20 }
  0x10   : > { %201 = sbr.rel (!%p80_p3) target bundleno = 30 (0x1e), region = 24  ;;  %s203_s26 = sand.u32 (%p80_p3), 1, %s910_s16  }
  0x11   : > { %s775_s27 = sshll.u32 (%p80_p3), %s918_s18, 2  ;;  %s774_s28 = sshll.u32 (%p80_p3), %s203_s26, 6 }
  0x12   : > { %s999_s5 = scalar_lea.vmem (%p80_p3), %s1070_s1, %s775_s27  ;;  %s205_s6 = scalar_lea.vmem (%p80_p3), [#allocation3], %s774_s28 }
  0x13   : > { %v227_v0 = vld [vmem:[%s999_s5] sm:$0xf] (%p80_p3)  ;;  %v229_v1 = vld [vmem:[%s999_s5 + $0x18] sm:$0xf] (%p80_p3)  ;;  %v231_v2 = vld [vmem:[%s999_s5 + $0x30] sm:$0xf] (%p80_p3) }
  0x14   : > { %228 = vst [vmem:[%s205_s6] sm:$0xf] (%p80_p3), %v227_v0  ;;  %230 = vst [vmem:[%s205_s6 + $0x4] sm:$0xf] (%p80_p3), %v229_v1  ;;  %v233_v3 = vld [vmem:[%s999_s5 + $0x48] sm:$0xf] (%p80_p3) }
  0x15   : > { %v235_v4 = vld [vmem:[%s999_s5 + $0x60] sm:$0xf]  ;;  %232 = vst [vmem:[%s205_s6 + $0x8] sm:$0xf] %v231_v2  ;;  %234 = vst [vmem:[%s205_s6 + $0xc] sm:$0xf] %v233_v3 }
  0x16   : > { %236 = vst [vmem:[%s205_s6 + $0x10] sm:$0xf] %v235_v4  ;;  %v237_v5 = vld [vmem:[%s999_s5 + $0x78] sm:$0xf]  ;;  %v239_v6 = vld [vmem:[%s999_s5 + $0x90] sm:$0xf] }
  0x17   : > { %v241_v7 = vld [vmem:[%s999_s5 + $0xa8] sm:$0xf]  ;;  %238 = vst [vmem:[%s205_s6 + $0x14] sm:$0xf] %v237_v5  ;;  %240 = vst [vmem:[%s205_s6 + $0x18] sm:$0xf] %v239_v6 }
  0x18   : > { %242 = vst [vmem:[%s205_s6 + $0x1c] sm:$0xf] %v241_v7  ;;  %v243_v8 = vld [vmem:[%s999_s5 + $0xc0] sm:$0xf]  ;;  %v245_v9 = vld [vmem:[%s999_s5 + $0xd8] sm:$0xf] }
  0x19   : > { %v247_v10 = vld [vmem:[%s999_s5 + $0xf0] sm:$0xf]  ;;  %244 = vst [vmem:[%s205_s6 + $0x20] sm:$0xf] %v243_v8  ;;  %246 = vst [vmem:[%s205_s6 + $0x24] sm:$0xf] %v245_v9 }
  0x1a   : > { %248 = vst [vmem:[%s205_s6 + $0x28] sm:$0xf] %v247_v10  ;;  %v249_v11 = vld [vmem:[%s999_s5 + $0x108] sm:$0xf]  ;;  %v251_v12 = vld [vmem:[%s999_s5 + $0x120] sm:$0xf] }
  0x1b   : > { %v253_v13 = vld [vmem:[%s999_s5 + $0x138] sm:$0xf]  ;;  %250 = vst [vmem:[%s205_s6 + $0x2c] sm:$0xf] %v249_v11  ;;  %252 = vst [vmem:[%s205_s6 + $0x30] sm:$0xf] %v251_v12 }
  0x1c   : > { %254 = vst [vmem:[%s205_s6 + $0x34] sm:$0xf] %v253_v13  ;;  %v255_v14 = vld [vmem:[%s999_s5 + $0x150] sm:$0xf]  ;;  %v257_v15 = vld [vmem:[%s999_s5 + $0x168] sm:$0xf] }
  0x1d   : > { %256 = vst [vmem:[%s205_s6 + $0x38] sm:$0xf] %v255_v14  ;;  %258 = vst [vmem:[%s205_s6 + $0x3c] sm:$0xf] %v257_v15 }
  0x1e PF: > { %p776_p8 = scmp.ge.s32.totalorder %s922_s19, 1  ;;  %p319_p9 = scmp.lt.s32.totalorder %s922_s19, 7 }
  0x20   : > { %p320_p10 = pnand %p776_p8, %p319_p9 }
  0x21   : > { %s326_s7 = sand.u32 (!%p320_p10), 1, %s906_s15   ;;  %p375_p11 = scmp.lt.s32.totalorder (!%p320_p10), %s914_s17, 5 }
  0x22   : > { %323 = sbr.rel (%p320_p10) target bundleno = 590 (0x24e), region = 69  ;;  %s777_s8 = sshll.u32 (!%p320_p10), %s326_s7, 6 }
  0x23   : > { %s328_s9 = scalar_lea.vmem (!%p320_p10), [#allocation3], %s777_s8  ;;  %s1032_s22 = sshll.u32 (!%p320_p10), %s326_s7, 4 }
  0x24   : > { %s1035_s23 = scalar_lea.vmem (!%p320_p10), [#allocation4], %s1032_s22  ;;  %s364_s15 = scalar_lea.vmem (!%p320_p10), [#allocation5], %s1032_s22 }
  0x27   : > { %v924_v16 = vmov 0.0   ;;  %vm925_vm0 = vmmov 0   ;;  %v867_v17 = vld [vmem:[%s328_s9 + $0x38] sm:$0xff]   ;;  %v868_v18 = vld [vmem:[%s328_s9 + $0x30] sm:$0xff]   ;;  %v869_v19 = vld [vmem:[%s328_s9 + $0x28] sm:$0xff]   ;;  %s376_s12 = scalar_select %p375_p11, %s914_s17, 5 }
  0x28   : > { %805 = vmatprep.subr.bf16.mxu0 %v924_v16  ;;  %821 = vmatprep.mubr.msk.bf16.mxu0 %vm925_vm0, %v924_v16  ;;  %v870_v20 = vld [vmem:[%s328_s9 + $0x20] sm:$0xff]   ;;  %v871_v21 = vld [vmem:[%s328_s9 + $0x18] sm:$0xff]   ;;  %v872_v22 = vld [vmem:[%s328_s9 + $0x10] sm:$0xff]   ;;  %s792_s26 = sshll.u32 (%p986_p6), %s914_s17, 3 }
  0x29   : > { %806 = vmatpush3.bf16.msra.mxu0 %v867_v17  ;;  %v873_v23 = vld [vmem:[%s328_s9 + $0x8] sm:$0xff]   ;;  %v874_v24 = vld [vmem:[%s328_s9] sm:$0xff]   ;;  %s377_s21 = scalar_lea.vmem %s1071_s2, %s376_s12  ;;  %s557_s29 = scalar_lea.vmem (%p986_p6), %s1072_s3, %s792_s26 }
  0x2a   : > { %807 = vmatprep.subr.bf16.mxu0 %v924_v16  ;;  %v875_v25 = vld [vmem:[%s1069_s0] sm:$0xff]  }
  0x2b   : > { %v789_v26 = vld [vmem:[%s377_s21] ss:$0 sm:$0xff] }
  0x2d   : > { %808 = vmatpush3.bf16.msra.mxu0 %v868_v18 }
  0x2e   : > { %809 = vmatprep.subr.bf16.mxu0 %v924_v16 }
  0x31   : > { %810 = vmatpush3.bf16.msra.mxu0 %v869_v19 }
  0x32   : > { %811 = vmatprep.subr.bf16.mxu0 %v924_v16 }
  0x35   : > { %812 = vmatpush3.bf16.msra.mxu0 %v870_v20 }
  0x36   : > { %813 = vmatprep.subr.bf16.mxu0 %v924_v16 }
  0x39   : > { %814 = vmatpush3.bf16.msra.mxu0 %v871_v21 }
  0x3a   : > { %815 = vmatprep.subr.bf16.mxu0 %v924_v16 }
  0x3d   : > { %816 = vmatpush3.bf16.msra.mxu0 %v872_v22 }
  0x3e   : > { %817 = vmatprep.subr.bf16.mxu0 %v924_v16 }
  0x41   : > { %818 = vmatpush3.bf16.msra.mxu0 %v873_v23 }
  0x42   : > { %819 = vmatprep.subr.bf16.mxu0 %v924_v16 }
  0x45   : > { %820 = vmatpush3.bf16.msra.mxu0 %v874_v24 }
  0x48   : > { %822 = vmatmul.mubr.bf16.vlgmr.msra.gmra.mxu0 %v875_v25 }
 0x108   : > { %v495_v27 = vpop.f32.mrf.mxu0 }
 0x109   : > { %v518_v28 = vadd.f32 %v789_v26, %v495_v27 }
 0x10a   : > { %v823_v29 = vpop.f32.mrf.mxu0 }
 0x10b   : > { %520 = vst [vmem:[%s1035_s23] sm:$0xff] %v518_v28  ;;  %522 = vmax.xlane.f32.xlu0 %v518_v28 }
 0x10c   : > { %v498_v30 = vpop.f32.mrf.mxu0 }
 0x10d   : > { %v519_v31 = vadd.f32 %v789_v26, %v498_v30 }
 0x10e   : > { %v824_v32 = vpop.f32.mrf.mxu0 }
 0x10f   : > { %521 = vst [vmem:[%s1035_s23 + $0x8] sm:$0xff] %v519_v31  ;;  %524 = vmax.xlane.f32.xlu0 %v519_v31 }
 0x112   : > { %v588_v47 = vld [vmem:[%s1035_s23] sm:$0xff] (%p986_p6) }
 0x113   : > { %589 = vst [vmem:[%s557_s29] sm:$0xff] (%p986_p6), %v588_v47 }
 0x116   : > { %v590_v48 = vld [vmem:[%s1035_s23 + $0x8] sm:$0xff] (%p986_p6) }
 0x117   : > { %591 = vst [vmem:[%s557_s29 + $0x30] sm:$0xff] (%p986_p6), %v590_v48 }
 0x194   : > { %v523_v33 = vpop.xlane.xlu0 %522 }
 0x195   : > { %v526_v34 = vsub.f32 %v518_v28, %v523_v33 }
 0x197   : > { %v528_v35 = vmul.f32 1.442695, %v526_v34 }
 0x198   : > { %v525_v36 = vpop.xlane.xlu0 %524 }
 0x199   : > { %876 = vpow2.f32 %v528_v35  ;;  %v527_v37 = vsub.f32 %v519_v31, %v525_v36 }
 0x19b   : > { %v530_v38 = vmul.f32 1.442695, %v527_v37 }
 0x19d   : > { %878 = vpow2.f32 %v530_v38 }
 0x1a6   : > { %v877_v39 = vpop.eup %876 }
 0x1a7   : > { %532 = vadd.xlane.f32.xlu1 %v877_v39 }
 0x1aa   : > { %v879_v40 = vpop.eup %878 }
 0x1ab   : > { %534 = vadd.xlane.f32.xlu1 %v879_v40 }
 0x230   : > { %v533_v41 = vpop.xlane.xlu1 %532 }
 0x231   : > { %880 = vrcp.f32 %v533_v41 }
 0x234   : > { %v535_v42 = vpop.xlane.xlu1 %534 }
 0x235   : > { %882 = vrcp.f32 %v535_v42 }
 0x23e   : > { %v881_v43 = vpop.eup %880 }
 0x23f   : > { %v538_v44 = vmul.f32 %v881_v43, %v877_v39 }
 0x241   : > { %540 = vst [vmem:[%s364_s15] sm:$0xff] %v538_v44  ;;  %552 = sbr.rel (!%p986_p6) target bundleno = 582 (0x246), region = 85 }
 0x242   : > { %v883_v45 = vpop.eup %882 }
 0x243   : > { %v539_v46 = vmul.f32 %v883_v45, %v879_v40 }
 0x245   : > { %541 = vst [vmem:[%s364_s15 + $0x8] sm:$0xff] %v539_v46 }
 0x246 PF: > { %597 = sbr.rel (!%p986_p6) target bundleno = 590 (0x24e), region = 123  ;;  %s793_s30 = sshll.u32 (%p986_p6), %s914_s17, 3 }
 0x247   : > { %s602_s7 = scalar_lea.vmem (%p986_p6), %s1073_s4, %s793_s30 }
 0x248   : > { %v633_v49 = vld [vmem:[%s364_s15] sm:$0xff] (%p986_p6) }
 0x249   : > { %634 = vst [vmem:[%s602_s7] sm:$0xff] (%p986_p6), %v633_v49 }
 0x24c   : > { %v635_v50 = vld [vmem:[%s364_s15 + $0x8] sm:$0xff] }
 0x24d   : > { %636 = vst [vmem:[%s602_s7 + $0x30] sm:$0xff] %v635_v50 }
 0x24e PF: > { %s15_s19 = sadd.s32 1, %s922_s19   ;;  %s1075_s15 = smov %s910_s16 }
 0x24f   : > { %p12_p12 = scmp.ge.s32.totalorder %s15_s19, 8   ;;  %s1076_s16 = smov %s991_s25 }
 0x250   : > { %s1077_s17 = smov %s918_s18  ;;  %s1078_s18 = smov %s1080_s20 }
 0x251   :  { %14 = sbr.rel (!%p12_p12) target bundleno = 3 (0x3), region = 210 }

</bundles_post_ra>
